<compile_context>
chip_gen: v6e
topology: v6e:2x2x1
jax: 0.10.0
libtpu: 0.0.40
codegen_flags: <defaults>
</compile_context>

<pallas_src>
import functools

import jax
import jax.numpy as jnp
from jax.experimental import pallas as pl
from jax.experimental.pallas import tpu as pltpu


def fcn_head_kernel(x_ref, w1t_ref, shift_ref, w2t_ref, b2_ref, o_ref, *, W):
    """FCNHead forward for one batch element (channels on sublanes).

    x_ref    : (1, Cin, H*W)   bf16  input, spatial flattened on the lane axis
    w1t_ref  : (9, Cmid, Cin)  bf16  3x3 conv weights, tap-major, BN scale folded in
    shift_ref: (Cmid, 1)       f32   fused BN shift  (beta - mean * scale)
    w2t_ref  : (Cout, Cmid)    bf16  1x1 conv weights (transposed)
    b2_ref   : (Cout, 1)       f32   1x1 conv bias
    o_ref    : (1, Cout, H*W)  f32   output, lane-dense on H*W
    """
    Cin = x_ref.shape[1]
    HW = x_ref.shape[2]
    Cmid = w1t_ref.shape[1]

    x = x_ref[0]                                        # (Cin, HW) bf16
    pad = W + 1
    zeros_pad = jnp.zeros((Cin, pad), dtype=x.dtype)
    # Zero-pad the flattened spatial axis by W+1 on each side (in registers, no
    # HBM traffic) so every 3x3 tap becomes a contiguous lane-offset window.
    xpad = jnp.concatenate([zeros_pad, x, zeros_pad], axis=1)   # (Cin, HW + 2W + 2)

    # Column-edge validity masks (hoisted out of the tap loop).
    col = jax.lax.broadcasted_iota(jnp.int32, (1, HW), 1) % W
    not_left_edge = col >= 1            # reading column j-1 is valid
    not_right_edge = col <= W - 2       # reading column j+1 is valid

    # 3x3 conv (padding=1, no bias; BN scale pre-folded): 9 shifted bf16 MXU
    # matmuls accumulated in f32. No reshapes / relayout copies per tap.
    acc = jnp.zeros((Cmid, HW), dtype=jnp.float32)
    for dw in (-1, 0, 1):
        part = jnp.zeros((Cmid, HW), dtype=jnp.float32)
        for dh in (-1, 0, 1):
            start = (dh + 1) * W + (dw + 1)
            patch = xpad[:, start:start + HW]           # (Cin, HW), lane window
            tap = (dh + 1) * 3 + (dw + 1)
            part = part + jnp.dot(w1t_ref[tap], patch,
                                  preferred_element_type=jnp.float32)
        if dw == -1:
            part = jnp.where(not_left_edge, part, 0.0)
        elif dw == 1:
            part = jnp.where(not_right_edge, part, 0.0)
        acc = acc + part

    # BatchNorm shift + ReLU (scale already folded into the conv weights).
    y = jnp.maximum(acc + shift_ref[...], 0.0)

    # Dropout(p=0.1) is identity at inference.
    # TODO(synk): training-mode dropout (pltpu.prng_seed / prng_random_bits mask).

    # 1x1 conv: (Cout, Cmid) @ (Cmid, HW) -> lane-dense (Cout, HW), plus bias.
    out = jnp.dot(w2t_ref[...], y.astype(jnp.bfloat16),
                  preferred_element_type=jnp.float32)
    o_ref[0] = (out + b2_ref[...]).astype(o_ref.dtype)


def fcn_head_forward(x_nchw, w1_hwio, bn_gamma, bn_beta, bn_mean, bn_var,
                     w2, b2, eps=1e-5):
    """x_nchw: (N, Cin, H, W)  ->  (N, Cout, H, W)   (inference FCNHead)."""
    N, Cin, H, W = x_nchw.shape
    Cmid = w1_hwio.shape[3]
    Cout = w2.shape[1]
    HW = H * W

    # NCHW -> (N, Cin, H*W): pure reshape, no transpose / no HBM padding.
    x_flat = x_nchw.reshape(N, Cin, HW).astype(jnp.bfloat16)

    # Fold BN scale into the 3x3 conv weights; keep only the shift in-kernel.
    scale = bn_gamma / jnp.sqrt(bn_var + eps)                      # (Cmid,)
    shift = (bn_beta - bn_mean * scale).reshape(Cmid, 1).astype(jnp.float32)
    # HWIO -> (9, Cmid, Cin), pre-transposed so each tap matmul is (Cmid,Cin)@(Cin,HW).
    w1t = jnp.transpose(w1_hwio, (0, 1, 3, 2)).reshape(9, Cmid, Cin)
    w1t = (w1t * scale[None, :, None]).astype(jnp.bfloat16)
    w2t = w2.T.astype(jnp.bfloat16)                                # (Cout, Cmid)
    b2c = b2.reshape(Cout, 1).astype(jnp.float32)

    kernel = functools.partial(fcn_head_kernel, W=W)

    out_flat = pl.pallas_call(
        kernel,
        out_shape=jax.ShapeDtypeStruct((N, Cout, HW), jnp.float32),
        grid_spec=pltpu.PrefetchScalarGridSpec(
            num_scalar_prefetch=0,
            grid=(N,),
            in_specs=[
                pl.BlockSpec((1, Cin, HW), lambda n: (n, 0, 0)),
                # Constant-index weight blocks (could be single-buffered /
                # VMEM-resident for realistic shapes).
                pl.BlockSpec((9, Cmid, Cin), lambda n: (0, 0, 0)),
                pl.BlockSpec((Cmid, 1), lambda n: (0, 0)),
                pl.BlockSpec((Cout, Cmid), lambda n: (0, 0)),
                pl.BlockSpec((Cout, 1), lambda n: (0, 0)),
            ],
            out_specs=pl.BlockSpec((1, Cout, HW), lambda n: (n, 0, 0)),
        ),
        compiler_params=pltpu.CompilerParams(
            dimension_semantics=("parallel",)),
    )(x_flat, w1t, shift, w2t, b2c)

    # (N, Cout, H*W) -> (N, Cout, H, W): free reshape, already NCHW.
    return out_flat.reshape(N, Cout, H, W)


def reference_forward(x_nchw, w1_hwio, bn_gamma, bn_beta, bn_mean, bn_var,
                      w2, b2, eps=1e-5):
    """Pure-JAX f32 reference (lax conv) for correctness checking."""
    y = jax.lax.conv_general_dilated(
        x_nchw.astype(jnp.float32),
        jnp.transpose(w1_hwio, (3, 2, 0, 1)),  # HWIO -> OIHW
        window_strides=(1, 1), padding=((1, 1), (1, 1)),
        dimension_numbers=("NCHW", "OIHW", "NCHW"))
    scale = bn_gamma / jnp.sqrt(bn_var + eps)
    shift = bn_beta - bn_mean * scale
    y = y * scale[None, :, None, None] + shift[None, :, None, None]
    y = jnp.maximum(y, 0.0)
    y = jax.lax.conv_general_dilated(
        y, w2.T[:, :, None, None],  # (Cout, Cmid, 1, 1)
        window_strides=(1, 1), padding="VALID",
        dimension_numbers=("NCHW", "OIHW", "NCHW"))
    return y + b2[None, :, None, None]


if __name__ == "__main__":
    # Small, FCNHead-consistent shapes: in_channels=16 -> inter_channels=4.
    N, Cin, H, W = 2, 16, 16, 16
    Cmid = Cin // 4
    Cout = 8

    key = jax.random.PRNGKey(0)
    k = jax.random.split(key, 6)
    x = jax.random.normal(k[0], (N, Cin, H, W), dtype=jnp.float32)
    w1 = 0.1 * jax.random.normal(k[1], (3, 3, Cin, Cmid), dtype=jnp.float32)  # HWIO
    bn_gamma = 1.0 + 0.1 * jax.random.normal(k[2], (Cmid,), dtype=jnp.float32)
    bn_beta = 0.1 * jax.random.normal(k[3], (Cmid,), dtype=jnp.float32)
    bn_mean = jnp.zeros((Cmid,), dtype=jnp.float32)   # fresh BN running stats
    bn_var = jnp.ones((Cmid,), dtype=jnp.float32)
    w2 = 0.1 * jax.random.normal(k[4], (Cmid, Cout), dtype=jnp.float32)
    b2 = 0.1 * jax.random.normal(k[5], (Cout,), dtype=jnp.float32)

    out = fcn_head_forward(x, w1, bn_gamma, bn_beta, bn_mean, bn_var, w2, b2)
    out = jax.block_until_ready(out)

    ref = reference_forward(x, w1, bn_gamma, bn_beta, bn_mean, bn_var, w2, b2)
    assert out.shape == (N, Cout, H, W)
    # bf16 MXU operands with f32 accumulation -> loosened tolerance vs f32 ref.
    assert jnp.allclose(out, ref, atol=5e-2, rtol=5e-2)

    print("KERNEL_OK")
</pallas_src>

<mosaic_0001>
module attributes {stable_mosaic.version = 11 : i64} {
  func.func @fcn_head_kernel(%arg0: i32, %arg1: memref<1x16x256xbf16, #tpu.memory_space<vmem>>, %arg2: memref<9x4x16xbf16, #tpu.memory_space<vmem>>, %arg3: memref<4x1xf32, #tpu.memory_space<vmem>>, %arg4: memref<8x4xbf16, #tpu.memory_space<vmem>>, %arg5: memref<8x1xf32, #tpu.memory_space<vmem>>, %arg6: memref<1x8x256xf32, #tpu.memory_space<vmem>>) attributes {dimension_semantics = [#tpu.dimension_semantics<parallel>], iteration_bounds = array<i64: 2>, scalar_prefetch = 0 : i64, scratch_operands = 0 : i64, tpu.core_type = #tpu.core_type<tc>, window_params = [{transform_indices = @transform_0, window_bounds = array<i64: 1, 16, 256>}, {pipeline_mode = #tpu.pipeline_mode<synchronous>, transform_indices = @transform_1, window_bounds = array<i64: 9, 4, 16>}, {pipeline_mode = #tpu.pipeline_mode<synchronous>, transform_indices = @transform_2, window_bounds = array<i64: 4, 1>}, {pipeline_mode = #tpu.pipeline_mode<synchronous>, transform_indices = @transform_3, window_bounds = array<i64: 8, 4>}, {pipeline_mode = #tpu.pipeline_mode<synchronous>, transform_indices = @transform_4, window_bounds = array<i64: 8, 1>}, {transform_indices = @transform_5, window_bounds = array<i64: 1, 8, 256>}]} {
    %c0 = arith.constant 0 : index
    %c0_0 = arith.constant 0 : index
    %c0_1 = arith.constant 0 : index
    %0 = vector.load %arg1[%c0, %c0_0, %c0_1] : memref<1x16x256xbf16, #tpu.memory_space<vmem>>, vector<1x16x256xbf16>
    %1 = vector.shape_cast %0 : vector<1x16x256xbf16> to vector<16x256xbf16>
    %cst = arith.constant 0.000000e+00 : bf16
    %2 = vector.broadcast %cst : bf16 to vector<16x17xbf16>
    %3 = tpu.concatenate %2, %1, %2 in 1 : vector<16x17xbf16>, vector<16x256xbf16>, vector<16x17xbf16> -> vector<16x290xbf16>
    %4 = tpu.iota {dimensions = array<i32: 1>} : vector<1x256xi32>
    %c16_i32 = arith.constant 16 : i32
    %c0_i32 = arith.constant 0 : i32
    %5 = arith.cmpi eq, %c16_i32, %c0_i32 : i32
    %c1_i32 = arith.constant 1 : i32
    %6 = arith.select %5, %c1_i32, %c16_i32 : i32
    %7 = vector.broadcast %6 : i32 to vector<1x256xi32>
    %8 = arith.remsi %4, %7 : vector<1x256xi32>
    %c0_i32_2 = arith.constant 0 : i32
    %9 = vector.broadcast %c0_i32_2 : i32 to vector<1x256xi32>
    %10 = arith.cmpi ne, %8, %9 : vector<1x256xi32>
    %c0_i32_3 = arith.constant 0 : i32
    %11 = vector.broadcast %c0_i32_3 : i32 to vector<1x256xi32>
    %12 = arith.cmpi slt, %8, %11 : vector<1x256xi32>
    %c0_i32_4 = arith.constant 0 : i32
    %13 = arith.cmpi slt, %6, %c0_i32_4 : i32
    %14 = vector.broadcast %13 : i1 to vector<1x256xi1>
    %15 = vector.broadcast %14 : vector<1x256xi1> to vector<1x256xi1>
    %16 = arith.xori %12, %15 : vector<1x256xi1>
    %17 = arith.andi %16, %10 : vector<1x256xi1>
    %18 = vector.broadcast %6 : i32 to vector<1x256xi32>
    %19 = arith.addi %8, %18 : vector<1x256xi32>
    %20 = arith.select %17, %19, %8 : vector<1x256xi1>, vector<1x256xi32>
    %c1_i32_5 = arith.constant 1 : i32
    %21 = vector.broadcast %c1_i32_5 : i32 to vector<1x256xi32>
    %22 = arith.cmpi sge, %20, %21 : vector<1x256xi32>
    %c14_i32 = arith.constant 14 : i32
    %23 = vector.broadcast %c14_i32 : i32 to vector<1x256xi32>
    %24 = arith.cmpi sle, %20, %23 : vector<1x256xi32>
    %cst_6 = arith.constant 0.000000e+00 : f32
    %25 = vector.broadcast %cst_6 : f32 to vector<4x256xf32>
    %cst_7 = arith.constant 0.000000e+00 : f32
    %26 = vector.broadcast %cst_7 : f32 to vector<4x256xf32>
    %27 = vector.extract_strided_slice %3 {offsets = [0, 0], sizes = [16, 256], strides = [1, 1]} : vector<16x290xbf16> to vector<16x256xbf16>
    %c0_8 = arith.constant 0 : index
    %c0_9 = arith.constant 0 : index
    %c0_10 = arith.constant 0 : index
    %28 = vector.load %arg2[%c0_8, %c0_9, %c0_10] : memref<9x4x16xbf16, #tpu.memory_space<vmem>>, vector<1x4x16xbf16>
    %29 = vector.shape_cast %28 : vector<1x4x16xbf16> to vector<4x16xbf16>
    %cst_11 = arith.constant dense<0.000000e+00> : vector<4x256xf32>
    %30 = tpu.matmul %29, %27, %cst_11 {dimension_numbers = #tpu.dot_dimension_numbers<[1], [0], [0], [1], [0, 0, 1, 1], [], []>} : vector<4x16xbf16>, vector<16x256xbf16>, vector<4x256xf32> -> vector<4x256xf32>
    %31 = arith.addf %26, %30 : vector<4x256xf32>
    %32 = vector.extract_strided_slice %3 {offsets = [0, 16], sizes = [16, 256], strides = [1, 1]} : vector<16x290xbf16> to vector<16x256xbf16>
    %c3 = arith.constant 3 : index
    %c0_12 = arith.constant 0 : index
    %c0_13 = arith.constant 0 : index
    %33 = vector.load %arg2[%c3, %c0_12, %c0_13] : memref<9x4x16xbf16, #tpu.memory_space<vmem>>, vector<1x4x16xbf16>
    %34 = vector.shape_cast %33 : vector<1x4x16xbf16> to vector<4x16xbf16>
    %cst_14 = arith.constant dense<0.000000e+00> : vector<4x256xf32>
    %35 = tpu.matmul %34, %32, %cst_14 {dimension_numbers = #tpu.dot_dimension_numbers<[1], [0], [0], [1], [0, 0, 1, 1], [], []>} : vector<4x16xbf16>, vector<16x256xbf16>, vector<4x256xf32> -> vector<4x256xf32>
    %36 = arith.addf %31, %35 : vector<4x256xf32>
    %37 = vector.extract_strided_slice %3 {offsets = [0, 32], sizes = [16, 256], strides = [1, 1]} : vector<16x290xbf16> to vector<16x256xbf16>
    %c6 = arith.constant 6 : index
    %c0_15 = arith.constant 0 : index
    %c0_16 = arith.constant 0 : index
    %38 = vector.load %arg2[%c6, %c0_15, %c0_16] : memref<9x4x16xbf16, #tpu.memory_space<vmem>>, vector<1x4x16xbf16>
    %39 = vector.shape_cast %38 : vector<1x4x16xbf16> to vector<4x16xbf16>
    %cst_17 = arith.constant dense<0.000000e+00> : vector<4x256xf32>
    %40 = tpu.matmul %39, %37, %cst_17 {dimension_numbers = #tpu.dot_dimension_numbers<[1], [0], [0], [1], [0, 0, 1, 1], [], []>} : vector<4x16xbf16>, vector<16x256xbf16>, vector<4x256xf32> -> vector<4x256xf32>
    %41 = arith.addf %36, %40 : vector<4x256xf32>
    %cst_18 = arith.constant 0.000000e+00 : f32
    %42 = vector.shape_cast %22 : vector<1x256xi1> to vector<1x256xi1>
    %43 = vector.broadcast %42 : vector<1x256xi1> to vector<4x256xi1>
    %44 = vector.broadcast %cst_18 : f32 to vector<4x256xf32>
    %45 = arith.select %43, %41, %44 : vector<4x256xi1>, vector<4x256xf32>
    %46 = arith.addf %25, %45 : vector<4x256xf32>
    %cst_19 = arith.constant 0.000000e+00 : f32
    %47 = vector.broadcast %cst_19 : f32 to vector<4x256xf32>
    %48 = vector.extract_strided_slice %3 {offsets = [0, 1], sizes = [16, 256], strides = [1, 1]} : vector<16x290xbf16> to vector<16x256xbf16>
    %c1 = arith.constant 1 : index
    %c0_20 = arith.constant 0 : index
    %c0_21 = arith.constant 0 : index
    %49 = vector.load %arg2[%c1, %c0_20, %c0_21] : memref<9x4x16xbf16, #tpu.memory_space<vmem>>, vector<1x4x16xbf16>
    %50 = vector.shape_cast %49 : vector<1x4x16xbf16> to vector<4x16xbf16>
    %cst_22 = arith.constant dense<0.000000e+00> : vector<4x256xf32>
    %51 = tpu.matmul %50, %48, %cst_22 {dimension_numbers = #tpu.dot_dimension_numbers<[1], [0], [0], [1], [0, 0, 1, 1], [], []>} : vector<4x16xbf16>, vector<16x256xbf16>, vector<4x256xf32> -> vector<4x256xf32>
    %52 = arith.addf %47, %51 : vector<4x256xf32>
    %53 = vector.extract_strided_slice %3 {offsets = [0, 17], sizes = [16, 256], strides = [1, 1]} : vector<16x290xbf16> to vector<16x256xbf16>
    %c4 = arith.constant 4 : index
    %c0_23 = arith.constant 0 : index
    %c0_24 = arith.constant 0 : index
    %54 = vector.load %arg2[%c4, %c0_23, %c0_24] : memref<9x4x16xbf16, #tpu.memory_space<vmem>>, vector<1x4x16xbf16>
    %55 = vector.shape_cast %54 : vector<1x4x16xbf16> to vector<4x16xbf16>
    %cst_25 = arith.constant dense<0.000000e+00> : vector<4x256xf32>
    %56 = tpu.matmul %55, %53, %cst_25 {dimension_numbers = #tpu.dot_dimension_numbers<[1], [0], [0], [1], [0, 0, 1, 1], [], []>} : vector<4x16xbf16>, vector<16x256xbf16>, vector<4x256xf32> -> vector<4x256xf32>
    %57 = arith.addf %52, %56 : vector<4x256xf32>
    %58 = vector.extract_strided_slice %3 {offsets = [0, 33], sizes = [16, 256], strides = [1, 1]} : vector<16x290xbf16> to vector<16x256xbf16>
    %c7 = arith.constant 7 : index
    %c0_26 = arith.constant 0 : index
    %c0_27 = arith.constant 0 : index
    %59 = vector.load %arg2[%c7, %c0_26, %c0_27] : memref<9x4x16xbf16, #tpu.memory_space<vmem>>, vector<1x4x16xbf16>
    %60 = vector.shape_cast %59 : vector<1x4x16xbf16> to vector<4x16xbf16>
    %cst_28 = arith.constant dense<0.000000e+00> : vector<4x256xf32>
    %61 = tpu.matmul %60, %58, %cst_28 {dimension_numbers = #tpu.dot_dimension_numbers<[1], [0], [0], [1], [0, 0, 1, 1], [], []>} : vector<4x16xbf16>, vector<16x256xbf16>, vector<4x256xf32> -> vector<4x256xf32>
    %62 = arith.addf %57, %61 : vector<4x256xf32>
    %63 = arith.addf %46, %62 : vector<4x256xf32>
    %cst_29 = arith.constant 0.000000e+00 : f32
    %64 = vector.broadcast %cst_29 : f32 to vector<4x256xf32>
    %65 = vector.extract_strided_slice %3 {offsets = [0, 2], sizes = [16, 256], strides = [1, 1]} : vector<16x290xbf16> to vector<16x256xbf16>
    %c2 = arith.constant 2 : index
    %c0_30 = arith.constant 0 : index
    %c0_31 = arith.constant 0 : index
    %66 = vector.load %arg2[%c2, %c0_30, %c0_31] : memref<9x4x16xbf16, #tpu.memory_space<vmem>>, vector<1x4x16xbf16>
    %67 = vector.shape_cast %66 : vector<1x4x16xbf16> to vector<4x16xbf16>
    %cst_32 = arith.constant dense<0.000000e+00> : vector<4x256xf32>
    %68 = tpu.matmul %67, %65, %cst_32 {dimension_numbers = #tpu.dot_dimension_numbers<[1], [0], [0], [1], [0, 0, 1, 1], [], []>} : vector<4x16xbf16>, vector<16x256xbf16>, vector<4x256xf32> -> vector<4x256xf32>
    %69 = arith.addf %64, %68 : vector<4x256xf32>
    %70 = vector.extract_strided_slice %3 {offsets = [0, 18], sizes = [16, 256], strides = [1, 1]} : vector<16x290xbf16> to vector<16x256xbf16>
    %c5 = arith.constant 5 : index
    %c0_33 = arith.constant 0 : index
    %c0_34 = arith.constant 0 : index
    %71 = vector.load %arg2[%c5, %c0_33, %c0_34] : memref<9x4x16xbf16, #tpu.memory_space<vmem>>, vector<1x4x16xbf16>
    %72 = vector.shape_cast %71 : vector<1x4x16xbf16> to vector<4x16xbf16>
    %cst_35 = arith.constant dense<0.000000e+00> : vector<4x256xf32>
    %73 = tpu.matmul %72, %70, %cst_35 {dimension_numbers = #tpu.dot_dimension_numbers<[1], [0], [0], [1], [0, 0, 1, 1], [], []>} : vector<4x16xbf16>, vector<16x256xbf16>, vector<4x256xf32> -> vector<4x256xf32>
    %74 = arith.addf %69, %73 : vector<4x256xf32>
    %75 = vector.extract_strided_slice %3 {offsets = [0, 34], sizes = [16, 256], strides = [1, 1]} : vector<16x290xbf16> to vector<16x256xbf16>
    %c8 = arith.constant 8 : index
    %c0_36 = arith.constant 0 : index
    %c0_37 = arith.constant 0 : index
    %76 = vector.load %arg2[%c8, %c0_36, %c0_37] : memref<9x4x16xbf16, #tpu.memory_space<vmem>>, vector<1x4x16xbf16>
    %77 = vector.shape_cast %76 : vector<1x4x16xbf16> to vector<4x16xbf16>
    %cst_38 = arith.constant dense<0.000000e+00> : vector<4x256xf32>
    %78 = tpu.matmul %77, %75, %cst_38 {dimension_numbers = #tpu.dot_dimension_numbers<[1], [0], [0], [1], [0, 0, 1, 1], [], []>} : vector<4x16xbf16>, vector<16x256xbf16>, vector<4x256xf32> -> vector<4x256xf32>
    %79 = arith.addf %74, %78 : vector<4x256xf32>
    %cst_39 = arith.constant 0.000000e+00 : f32
    %80 = vector.shape_cast %24 : vector<1x256xi1> to vector<1x256xi1>
    %81 = vector.broadcast %80 : vector<1x256xi1> to vector<4x256xi1>
    %82 = vector.broadcast %cst_39 : f32 to vector<4x256xf32>
    %83 = arith.select %81, %79, %82 : vector<4x256xi1>, vector<4x256xf32>
    %84 = arith.addf %63, %83 : vector<4x256xf32>
    %c0_40 = arith.constant 0 : index
    %c0_41 = arith.constant 0 : index
    %85 = vector.load %arg3[%c0_40, %c0_41] : memref<4x1xf32, #tpu.memory_space<vmem>>, vector<4x1xf32>
    %86 = vector.broadcast %85 : vector<4x1xf32> to vector<4x256xf32>
    %87 = arith.addf %84, %86 : vector<4x256xf32>
    %cst_42 = arith.constant 0.000000e+00 : f32
    %88 = vector.broadcast %cst_42 : f32 to vector<4x256xf32>
    %89 = arith.maximumf %87, %88 : vector<4x256xf32>
    %c0_43 = arith.constant 0 : index
    %c0_44 = arith.constant 0 : index
    %90 = vector.load %arg4[%c0_43, %c0_44] : memref<8x4xbf16, #tpu.memory_space<vmem>>, vector<8x4xbf16>
    %91 = arith.truncf %89 : vector<4x256xf32> to vector<4x256xbf16>
    %cst_45 = arith.constant dense<0.000000e+00> : vector<8x256xf32>
    %92 = tpu.matmul %90, %91, %cst_45 {dimension_numbers = #tpu.dot_dimension_numbers<[1], [0], [0], [1], [0, 0, 1, 1], [], []>} : vector<8x4xbf16>, vector<4x256xbf16>, vector<8x256xf32> -> vector<8x256xf32>
    %c0_46 = arith.constant 0 : index
    %c0_47 = arith.constant 0 : index
    %93 = vector.load %arg5[%c0_46, %c0_47] : memref<8x1xf32, #tpu.memory_space<vmem>>, vector<8x1xf32>
    %94 = vector.broadcast %93 : vector<8x1xf32> to vector<8x256xf32>
    %95 = arith.addf %92, %94 : vector<8x256xf32>
    %c0_48 = arith.constant 0 : index
    %c0_49 = arith.constant 0 : index
    %c0_50 = arith.constant 0 : index
    %96 = vector.load %arg6[%c0_48, %c0_49, %c0_50] : memref<1x8x256xf32, #tpu.memory_space<vmem>>, vector<1x8x256xf32>
    %97 = vector.shape_cast %96 : vector<1x8x256xf32> to vector<8x256xf32>
    %98 = vector.shape_cast %95 : vector<8x256xf32> to vector<1x8x256xf32>
    tpu.vector_store %arg6[%c0_48, %c0_49, %c0_50], %98 {strides = array<i32>} : memref<1x8x256xf32, #tpu.memory_space<vmem>>, vector<1x8x256xf32>,
    return
  }
  func.func @transform_0(%arg0: i32) -> (i32, i32, i32) {
    %c0_i32 = arith.constant 0 : i32
    %c0_i32_0 = arith.constant 0 : i32
    %c0_i32_1 = arith.constant 0 : i32
    return %arg0, %c0_i32, %c0_i32_0 : i32, i32, i32
  }
  func.func @transform_1(%arg0: i32) -> (i32, i32, i32) {
    %c0_i32 = arith.constant 0 : i32
    %c0_i32_0 = arith.constant 0 : i32
    %c0_i32_1 = arith.constant 0 : i32
    %c0_i32_2 = arith.constant 0 : i32
    return %c0_i32, %c0_i32_0, %c0_i32_1 : i32, i32, i32
  }
  func.func @transform_2(%arg0: i32) -> (i32, i32) {
    %c0_i32 = arith.constant 0 : i32
    %c0_i32_0 = arith.constant 0 : i32
    %c0_i32_1 = arith.constant 0 : i32
    return %c0_i32, %c0_i32_0 : i32, i32
  }
  func.func @transform_3(%arg0: i32) -> (i32, i32) {
    %c0_i32 = arith.constant 0 : i32
    %c0_i32_0 = arith.constant 0 : i32
    %c0_i32_1 = arith.constant 0 : i32
    return %c0_i32, %c0_i32_0 : i32, i32
  }
  func.func @transform_4(%arg0: i32) -> (i32, i32) {
    %c0_i32 = arith.constant 0 : i32
    %c0_i32_0 = arith.constant 0 : i32
    %c0_i32_1 = arith.constant 0 : i32
    return %c0_i32, %c0_i32_0 : i32, i32
  }
  func.func @transform_5(%arg0: i32) -> (i32, i32, i32) {
    %c0_i32 = arith.constant 0 : i32
    %c0_i32_0 = arith.constant 0 : i32
    %c0_i32_1 = arith.constant 0 : i32
    return %arg0, %c0_i32, %c0_i32_0 : i32, i32, i32
  }
}

</mosaic_0001>

<bundles_post_ra>
// kernel: tpu_custom_call.1
= control target key start
LH: loop header
LB: loop body
LE: loop exit
PB: predicated region body
PF: predicated region fallthrough
CT: control target
= control target key end

     0   :  { %10 = vsyncpa [#allocation3], 0  ;;  %s1438_s0 = inlined_call_operand.hbm [shape: bf16[2,16,256], index: 0, kind: input, shape index: {}]   ;;  %s1439_s1 = inlined_call_operand.vmem [shape: bf16[9,4,16], index: 1, kind: input, shape index: {}]   ;;  %s1440_s2 = inlined_call_operand.vmem [shape: f32[4,1], index: 2, kind: input, shape index: {}]   ;;  %s1441_s3 = inlined_call_operand.vmem [shape: bf16[8,4], index: 3, kind: input, shape index: {}]   ;;  %s1442_s4 = inlined_call_operand.vmem [shape: f32[8,1], index: 4, kind: input, shape index: {}]   ;;  %s1443_s5 = inlined_call_operand.hbm [shape: f32[2,8,256], index: 5, kind: output, shape index: {}]  }
   0x1   :  { %12 = vsyncpa [#allocation3 + $0x1], 0 }
   0x2   :  { %13 = vsyncpa [#allocation4], 0 }
   0x3   :  { %15 = vsyncpa [#allocation4 + $0x1], 0  ;;  %s1225_s18 = smov 0   ;;  %s1227_s19 = smov 0  }
   0x4   :  { %s1229_s20 = smov 0   ;;  %s1231_s21 = smov 0  }
   0x5 LB: > { %s1246_s22 = sadd.s32 4294967295, %s1179_s21   ;;  %s985_s23 = sadd.s32 4294967294, %s1179_s21   ;;  %s1179_s21 = sphi %s1231_s21, %s1458_s21   ;;  %s1175_s20 = sphi %s1229_s20, %s1457_s20   ;;  %s1171_s19 = sphi %s1227_s19, %s1456_s19   ;;  %s1167_s18 = sphi %s1225_s18, %s1455_s18  }
   0x6   : > { %s1250_s24 = sadd.s32 1, %s1179_s21   ;;  %s28_s25 = sadd.s32 1, %s1175_s20 }
   0x7   : > { %s25_s26 = ssub.s32 %s1179_s21, %s1250_s24  ;;  %p35_p0 = scmp.ne.s32.totalorder %s1175_s20, %s1171_s19 }
   0x8   : > { %p26_p1 = scmp.eq.s32.totalorder %s25_s26, 0  ;;  %p36_p2 = scmp.eq.s32.totalorder %s1179_s21, 0 }
   0x9   : > { %p41_p3 = scmp.ne.s32.totalorder %s1171_s19, %s1167_s18  ;;  %p42_p4 = scmp.eq.s32.totalorder %s1246_s22, 0 }
   0xa   : > { %s1262_s27 = scalar_select %p26_p1, %s1175_s20, %s28_s25  }
   0xb   : > { %p1264_p5 = por %p36_p2, %p35_p0  ;;  %p1268_p6 = por %p42_p4, %p41_p3 }
   0xc   : > { %p149_p7 = scmp.eq.s32.totalorder %s1246_s22, 1  ;;  %p155_p8 = scmp.eq.s32.totalorder %s985_s23, 1 }
   0xd   : > { %s1447_s29 = scalar_select %p1268_p6, 1, 0 }
   0xe   : > { %p1036_p10 = scmp.lt.s32.totalorder %s1179_s21, 2  ;;  %p1275_p11 = por %p149_p7, %p35_p0 }
   0xf   : > { %p1279_p12 = por %p155_p8, %p41_p3  ;;  %s187_s7 = sand.u32 1, %s1175_s20  }
  0x10   : > { %s1448_s30 = scalar_select %p1275_p11, 1, 0 }
  0x11   : > { %s1449_s6 = scalar_select %p1279_p12, 1, 0 }
  0x12   : > { %s1022_s8 = sshll.u32 %s1179_s21, 8  ;;  %s988_s9 = sshll.u32 %s187_s7, 4 }
  0x13   : > { %s1288_s12 = scalar_lea.hbm %s1438_s0, %s1022_s8  ;;  %s191_s13 = scalar_lea.vmem [#allocation2], %s988_s9 }
  0x14   : > { %s198_s14 = sshll.u32 %s191_s13, 4  ;;  %p1292_p13 = pnand %p1036_p10, %p1264_p5  ;;  %s1296_s14 = int_to_ptr.vmem [resolvable:$true] %s198_s14 }
  0x15   : > { %s1298_s16 = scalar_lea.sflag [#allocation3], %s187_s7  ;;  %s1087_s17 = scalar_lea.hbm %s1288_s12, 256 }
  0x16   : > { %p1088_p0 = scmp.ne.s32.totalorder %s1288_s12, %s1087_s17  ;;  %p1089_p1 = pneg %p1292_p13 }
  0x17   : > { %s1092_s26 = scalar_lea.hbm %s1438_s0, 512  ;;  %p1093_p4 = scmp.lt.s32.totalorder %s1288_s12, %s1438_s0 }
  0x18   : > { %p1090_p2 = pnand %p1089_p1, %p1088_p0  ;;  %p1094_p5 = scmp.lt.s32.totalorder %s1092_s26, %s1087_s17 }
  0x1a   : > { %p1091_p3 = pneg %p1090_p2  ;;  %p1095_p7 = por %p1094_p5, %p1093_p4 }
  0x1c   : > { %p1096_p8 = pnand %p1095_p7, %p1091_p3 }
  0x1e   : > { %1099 = shalt.err (!%p1096_p8)
}
  0x1f   : > { %s1100_s7 = scalar_lea.vmem %s1296_s14, 256  ;;  %s1181_s9 = smov [#allocation2]  }
  0x20   : > { %p1101_p10 = scmp.ne.s32.totalorder %s1296_s14, %s1100_s7  ;;  %s1105_s10 = sshll.u32 %s1181_s9, 4  ;;  %s1106_s10 = int_to_ptr.vmem [resolvable:$false] %s1105_s10 }
  0x21   : > { %s1107_s11 = scalar_lea.vmem %s1106_s10, 512  ;;  %p1108_p2 = scmp.lt.s32.totalorder %s1296_s14, %s1106_s10 }
  0x22   : > { %p1103_p9 = pnand %p1101_p10, %p1089_p1  ;;  %p1109_p12 = scmp.lt.s32.totalorder %s1107_s11, %s1100_s7 }
  0x24   : > { %p1104_p0 = pneg %p1103_p9  ;;  %p1110_p11 = por %p1109_p12, %p1108_p2 }
  0x26   : > { %p1111_p6 = pnand %p1110_p11, %p1104_p0 }
  0x28   : > { %1114 = shalt.err (!%p1111_p6)
}
  0x29   : > { %s1182_s13 = smov 128   ;;  %s1183_s17 = smov 8  }
  0x2a   : > { %1031 = dma.hbm_to_vmem [thread:$0]  (!%p1292_p13), %s1288_s12, 256, %s1296_s14, %s1298_s16, %s1182_s13, %s1182_s13, %s1183_s17  }
  0x2b   : > { %p991_p9 = scmp.ge.s32.totalorder %s1179_s21, 1  ;;  %p206_p1 = scmp.lt.s32.totalorder %s1179_s21, 3 }
  0x2d   : > { %p207_p3 = pnand %p991_p9, %p206_p1 }
  0x2e   : > { %s1322_s23 = sand.u32 (!%p207_p3), 1, %s1171_s19   ;;  %p1451_p6 = scmp.ne.s32.totalorder (!%p207_p3), %s1447_s29, 0 }
  0x2f   : > { %210 = sbr.rel (%p207_p3) target bundleno = 762 (0x2fa), region = 40  ;;  %s992_s25 = sshll.u32 (!%p207_p3), %s1322_s23, 4 }
  0x30   : > { %s213_s26 = scalar_lea.sflag (!%p207_p3), [#allocation3], %s1322_s23  ;;  %s216_s28 = scalar_lea.vmem (!%p207_p3), [#allocation2], %s992_s25 }
  0x34   : > { %1158 = dma.done.wait (%p1451_p6), %s213_s26, 256  }
  0x35   : > { %1160 = vsyncadd (%p1451_p6), %s213_s26, 4294967040  ;;  %v1084_v0 = vld [vmem:[%s216_s28] ss:$8 sps:$4 sm:$0xff]   ;;  %v1086_v1 = vld [vmem:[%s216_s28 + $0x4] ss:$8 sps:$4 sm:$0xff]   ;;  %s1184_s12 = smov 17  }
  0x36   : > { %254 = vrot.lane.b32.xlu0 %v1084_v0, %s1184_s12  ;;  %vm258_vm0 = vcmask 138240   ;;  %s1185_s14 = smov 112   ;;  %v1186_v4 = vmov 0   ;;  %s1187_s29 = smov 96   ;;  %v299_v8 = vld [vmem:[%s1439_s1] sm:$0x3] }
  0x37   : > { %351 = vmatprep.mubr.bf16.mxu0 %v1186_v4  ;;  %395 = vmatprep.mubr.bf16.mxu1 %v1186_v4  ;;  %vm998_vm1 = vmneg %vm258_vm0  ;;  %s1188_s8 = smov 111   ;;  %vm315_vm2 = vcmask 130048   ;;  %s1189_s7 = smov 127   ;;  %v827_v9 = vld [vmem:[%s1440_s2] sm:$0xf]  ;;  %vm310_vm3 = vcmask 916480  }
  0x38   : > { %1082 = vset.pattern.permute.xlu0 %v1186_v4  ;;  %1083 = vset.pattern.permute.xlu1 %v1186_v4  ;;  %s1190_s9 = smov 95   ;;  %s1191_s10 = smov 110   ;;  %vm412_vm4 = vcmask 785408   ;;  %v996_v17 = vld [vmem:[%s1439_s1 + $0x6] sm:$0x3]  ;;  %vm481_vm5 = vcmask 908288  }
  0x39   : > { %s1192_s11 = smov 126   ;;  %s1193_s13 = smov 94   ;;  %v1001_v24 = vld [vmem:[%s1439_s1 + $0xc] sm:$0x3]  ;;  %vm536_vm6 = vcmask 1039360   ;;  %vm593_vm7 = vcmask 777216  }
  0x3a   : > { %256 = vrot.lane.b32.xlu0 %v1086_v1, %s1184_s12  ;;  %v1004_v29 = vld [vmem:[%s1439_s1 + $0x8] sm:$0x3]  ;;  %v1003_v36 = vld [vmem:[%s1439_s1 + $0x2] sm:$0x3]  ;;  %vm656_vm8 = vcmask 900096   ;;  %vm711_vm9 = vcmask 1031168  }
  0x3b   : > { %v1007_v40 = vld [vmem:[%s1439_s1 + $0xe] sm:$0x3]  ;;  %v1010_v47 = vld [vmem:[%s1439_s1 + $0xa] sm:$0x3]  ;;  %vm768_vm10 = vcmask 769024   ;;  %v840_v62 = vld [vmem:[%s1442_s4] sm:$0xff] }
  0x3c   : > { %v1009_v51 = vld [vmem:[%s1439_s1 + $0x4] sm:$0x3]  ;;  %v1013_v57 = vld [vmem:[%s1439_s1 + $0x10] sm:$0x3]  ;;  %vm850_vm15 = vcmask 1041408   ;;  %p1452_p12 = scmp.ne.s32.totalorder %s1448_s30, 0 }
  0x3d   : > { %s1194_s17 = smov [#allocation5]  }
  0x3e   : > { %s1119_s26 = sshll.u32 %s1194_s17, 4  ;;  %s1120_s26 = int_to_ptr.vmem [resolvable:$false] %s1119_s26 }
  0x3f   : > { %s1121_s28 = scalar_lea.vmem %s1120_s26, 512 }
  0xa8   : > { %v255_v2 = vpop.permute.xlu0 %254 }
  0xa9   : > { %v264_v3 = vsel %vm258_vm0, 0, %v255_v2 }
  0xaa   : > { %304 = vrot.lane.b32.xlu0 %v264_v3, %s1185_s14 }
  0xac   : > { %v257_v5 = vpop.permute.xlu0 %256 }
  0xad   : > { %v259_v6 = vsel %vm258_vm0, %v255_v2, %v257_v5  ;;  %v267_v7 = vsel %vm258_vm0, %v257_v5, 0  ;;  %vm846_vm0 = vcmask 31744  }
  0xae   : > { %410 = vrot.lane.b32.xlu0 %v267_v7, %s1187_s29  ;;  %306 = vrot.lane.b32.xlu1 %v259_v6, %s1185_s14 }
  0xaf   : > { %377 = vmatprep.subr.bf16.mxu1 %v259_v6 }
  0xb0   : > { %999 = vmatpush1.bf16.msk.msra.mxu1 %vm998_vm1, %v255_v2 }
  0xb2   : > { %477 = vrot.lane.b32.xlu0 %v259_v6, %s1188_s8  ;;  %308 = vrot.lane.b32.xlu1 %v267_v7, %s1185_s14 }
  0xb3   : > { %1000 = vmatmul.mubr.msk.bf16.vlgmr.msra.gmra.mxu1 %vm315_vm2, %v299_v8 }
  0xb4   : > { %521 = vmatprep.mubr.bf16.mxu1 %v1186_v4 }
  0xb6   : > { %475 = vrot.lane.b32.xlu0 %v264_v3, %s1188_s8  ;;  %408 = vrot.lane.b32.xlu1 %v259_v6, %s1187_s29 }
  0xba   : > { %534 = vrot.lane.b32.xlu0 %v267_v7, %s1189_s7  ;;  %406 = vrot.lane.b32.xlu1 %v264_v3, %s1187_s29 }
  0xbe   : > { %589 = vrot.lane.b32.xlu0 %v259_v6, %s1190_s9  ;;  %479 = vrot.lane.b32.xlu1 %v267_v7, %s1188_s8  ;;  %s1023_s8 = sshll.u32 %s1246_s22, 8  ;;  %s901_s22 = scalar_lea.sflag [#allocation4], %s1322_s23 }
  0xc2   : > { %587 = vrot.lane.b32.xlu0 %v264_v3, %s1190_s9  ;;  %532 = vrot.lane.b32.xlu1 %v259_v6, %s1189_s7 }
  0xc6   : > { %654 = vrot.lane.b32.xlu0 %v267_v7, %s1191_s10  ;;  %530 = vrot.lane.b32.xlu1 %v264_v3, %s1189_s7  ;;  %s242_s7 = scalar_lea.vmem [#allocation5], %s992_s25 }
  0xca   : > { %707 = vrot.lane.b32.xlu0 %v259_v6, %s1192_s11  ;;  %591 = vrot.lane.b32.xlu1 %v267_v7, %s1190_s9  ;;  %s915_s9 = sshll.u32 %s242_s7, 4  ;;  %s1397_s9 = int_to_ptr.vmem [resolvable:$true] %s915_s9 }
  0xcb   : > { %s1115_s25 = scalar_lea.vmem %s1397_s9, 256  ;;  %p1122_p5 = scmp.lt.s32.totalorder %s1397_s9, %s1120_s26 }
  0xcc   : > { %p1116_p11 = scmp.ne.s32.totalorder %s1397_s9, %s1115_s25  ;;  %p1123_p7 = scmp.lt.s32.totalorder %s1121_s28, %s1115_s25 }
  0xce   : > { %705 = vrot.lane.b32.xlu0 %v264_v3, %s1192_s11  ;;  %652 = vrot.lane.b32.xlu1 %v259_v6, %s1191_s10  ;;  %p1117_p13 = pnand %p1116_p11, %p1452_p12  ;;  %p1124_p8 = por %p1123_p7, %p1122_p5 }
  0xd0   : > { %p1118_p4 = pneg %p1117_p13 }
  0xd2   : > { %766 = vrot.lane.b32.xlu0 %v267_v7, %s1193_s13  ;;  %650 = vrot.lane.b32.xlu1 %v264_v3, %s1191_s10  ;;  %p1125_p10 = pnand %p1124_p8, %p1118_p4 }
  0xd6   : > { %709 = vrot.lane.b32.xlu1 %v267_v7, %s1192_s11  ;;  %830 = vperm.xlu0 %1082, %v827_v9  }
  0xda   : > { %764 = vrot.lane.b32.xlu1 %v259_v6, %s1193_s13 }
  0xde   : > { %762 = vrot.lane.b32.xlu1 %v264_v3, %s1193_s13  ;;  %s1395_s13 = scalar_lea.hbm %s1443_s5, %s1023_s8 }
  0xe2   : > { %843 = vperm.xlu1 %1083, %v840_v62  }
 0x11c   : > { %v305_v10 = vpop.permute.xlu0 %304 }
 0x120   : > { %v307_v11 = vpop.permute.xlu1 %306  ;;  %v411_v12 = vpop.permute.xlu0 %410 }
 0x121   : > { %v311_v16 = vsel %vm310_vm3, %v305_v10, %v307_v11 }
 0x124   : > { %v309_v13 = vpop.permute.xlu1 %308  ;;  %v478_v14 = vpop.permute.xlu0 %477 }
 0x125   : > { %v312_v15 = vsel %vm310_vm3, %v307_v11, %v309_v13 }
 0x126   : > { %333 = vmatprep.subr.bf16.mxu0 %v312_v15 }
 0x127   : > { %334 = vmatpush1.bf16.msra.mxu0 %v311_v16 }
 0x128   : > { %v409_v18 = vpop.permute.xlu1 %408  ;;  %v476_v19 = vpop.permute.xlu0 %475 }
 0x129   : > { %v414_v20 = vsel %vm412_vm4, %v409_v18, %v411_v12  ;;  %v482_v28 = vsel %vm481_vm5, %v476_v19, %v478_v14 }
 0x12a   : > { %434 = vmatprep.subr.bf16.mxu0 %v414_v20  ;;  %997 = vmatmul.mubr.msk.bf16.vlgmr.msra.gmra.mxu0 %vm315_vm2, %v996_v17  ;;  %v268_v17 = vlaneseq }
 0x12b   : > { %452 = vmatprep.mubr.bf16.mxu0 %v1186_v4 }
 0x12c   : > { %v407_v21 = vpop.permute.xlu1 %406  ;;  %v535_v22 = vpop.permute.xlu0 %534  ;;  %v269_v20 = vand.u32 127, %v268_v17 }
 0x12d   : > { %v413_v23 = vsel %vm412_vm4, %v407_v21, %v409_v18 }
 0x12e   : > { %435 = vmatpush1.bf16.msra.mxu0 %v413_v23  ;;  %v270_v23 = vadd.s32 128, %v269_v20 }
 0x130   : > { %v480_v25 = vpop.permute.xlu1 %479  ;;  %v590_v26 = vpop.permute.xlu0 %589 }
 0x131   : > { %v483_v27 = vsel %vm481_vm5, %v478_v14, %v480_v25 }
 0x132   : > { %503 = vmatprep.subr.bf16.mxu1 %v483_v27  ;;  %1002 = vmatmul.mubr.msk.bf16.vlgmr.msra.gmra.mxu0 %vm315_vm2, %v1001_v24  ;;  %v275_v27 = vand.u32 15, %v269_v20 }
 0x133   : > { %504 = vmatpush1.bf16.msra.mxu1 %v482_v28  ;;  %576 = vmatprep.mubr.bf16.mxu0 %v1186_v4 }
 0x134   : > { %v533_v30 = vpop.permute.xlu1 %532  ;;  %v588_v31 = vpop.permute.xlu0 %587  ;;  %vm295_vm11 = vcmp.ge.s32.totalorder %v275_v27, 1  ;;  %vm297_vm13 = vcmp.le.s32.totalorder %v275_v27, 14 }
 0x135   : > { %v538_v32 = vsel %vm536_vm6, %v533_v30, %v535_v22  ;;  %v594_v39 = vsel %vm593_vm7, %v588_v31, %v590_v26 }
 0x136   : > { %558 = vmatprep.subr.bf16.mxu0 %v538_v32  ;;  %1005 = vmatmul.mubr.msk.bf16.vlgmr.msra.gmra.mxu1 %vm315_vm2, %v1004_v29  ;;  %v282_v32 = vand.u32 15, %v270_v23 }
 0x137   : > { %633 = vmatprep.mubr.bf16.mxu1 %v1186_v4 }
 0x138   : > { %v531_v33 = vpop.permute.xlu1 %530  ;;  %v655_v35 = vpop.permute.xlu0 %654  ;;  %vm296_vm12 = vcmp.ge.s32.totalorder %v282_v32, 1  ;;  %vm298_vm14 = vcmp.le.s32.totalorder %v282_v32, 14 }
 0x139   : > { %v537_v34 = vsel %vm536_vm6, %v531_v33, %v533_v30 }
 0x13a   : > { %559 = vmatpush1.bf16.msra.mxu0 %v537_v34 }
 0x13c   : > { %v592_v37 = vpop.permute.xlu1 %591  ;;  %v708_v41 = vpop.permute.xlu0 %707 }
 0x13d   : > { %v595_v38 = vsel %vm593_vm7, %v590_v26, %v592_v37  ;;  %1006 = vmatmul.mubr.msk.bf16.vlgmr.msra.gmra.mxu0 %vm315_vm2, %v1003_v36 }
 0x13e   : > { %615 = vmatprep.subr.bf16.mxu1 %v595_v38  ;;  %696 = vmatprep.mubr.bf16.mxu0 %v1186_v4 }
 0x13f   : > { %616 = vmatpush1.bf16.msra.mxu1 %v594_v39 }
 0x140   : > { %v653_v42 = vpop.permute.xlu1 %652  ;;  %v706_v46 = vpop.permute.xlu0 %705 }
 0x141   : > { %v658_v43 = vsel %vm656_vm8, %v653_v42, %v655_v35  ;;  %v712_v50 = vsel %vm711_vm9, %v706_v46, %v708_v41 }
 0x142   : > { %1008 = vmatmul.mubr.msk.bf16.vlgmr.msra.gmra.mxu1 %vm315_vm2, %v1007_v40  ;;  %678 = vmatprep.subr.bf16.mxu0 %v658_v43 }
 0x143   : > { %751 = vmatprep.mubr.bf16.mxu1 %v1186_v4 }
 0x144   : > { %v651_v44 = vpop.permute.xlu1 %650  ;;  %v767_v52 = vpop.permute.xlu0 %766 }
 0x145   : > { %v657_v45 = vsel %vm656_vm8, %v651_v44, %v653_v42 }
 0x146   : > { %679 = vmatpush1.bf16.msra.mxu0 %v657_v45 }
 0x148   : > { %v710_v48 = vpop.permute.xlu1 %709 }
 0x149   : > { %1011 = vmatmul.mubr.msk.bf16.vlgmr.msra.gmra.mxu0 %vm315_vm2, %v1010_v47  ;;  %v713_v49 = vsel %vm711_vm9, %v708_v41, %v710_v48 }
 0x14a   : > { %733 = vmatprep.subr.bf16.mxu1 %v713_v49  ;;  %808 = vmatprep.mubr.bf16.mxu0 %v1186_v4 }
 0x14b   : > { %734 = vmatpush1.bf16.msra.mxu1 %v712_v50 }
 0x14c   : > { %v765_v53 = vpop.permute.xlu1 %764 }
 0x14d   : > { %v770_v54 = vsel %vm768_vm10, %v765_v53, %v767_v52 }
 0x14e   : > { %1012 = vmatmul.mubr.msk.bf16.vlgmr.msra.gmra.mxu1 %vm315_vm2, %v1009_v51  ;;  %790 = vmatprep.subr.bf16.mxu0 %v770_v54 }
 0x14f   : > { %889 = vmatprep.mubr.bf16.mxu1 %v1186_v4 }
 0x150   : > { %v763_v55 = vpop.permute.xlu1 %762 }
 0x151   : > { %v769_v56 = vsel %vm768_vm10, %v763_v55, %v765_v53  ;;  %v831_v50 = vpop.permute.xlu0 %830 }
 0x152   : > { %791 = vmatpush1.bf16.msra.mxu0 %v769_v56 }
 0x155   : > { %1014 = vmatmul.mubr.msk.bf16.vlgmr.msra.gmra.mxu0 %vm315_vm2, %v1013_v57 }
 0x173   : > { %v397_v58 = vpop.f32.mrf.mxu1 }
 0x175   : > { %v399_v59 = vpop.f32.mrf.mxu1 }
 0x177   : > { %v401_v60 = vpop.f32.mrf.mxu1 }
 0x179   : > { %v402_v61 = vpop.f32.mrf.mxu1 }
 0x1ea   : > { %v353_v63 = vpop.f32.mrf.mxu0 }
 0x1eb   : > { %v398_v25 = vadd.f32 %v397_v58, %v353_v63 }
 0x1ec   : > { %v355_v0 = vpop.f32.mrf.mxu0 }
 0x1ed   : > { %v400_v30 = vadd.f32 %v399_v59, %v355_v0  ;;  %v837_v0 = vld [vmem:[%s1441_s3] sm:$0xf] }
 0x1ee   : > { %v357_v1 = vpop.f32.mrf.mxu0 }
 0x1ef   : > { %v844_v1 = vpop.permute.xlu1 %843 }
 0x1f0   : > { %v358_v2 = vpop.f32.mrf.mxu0 }
 0x1f2   : > { %v454_v3 = vpop.f32.mrf.mxu0 }
 0x1f3   : > { %v461_v34 = vadd.f32 %v454_v3, %v398_v25 }
 0x1f4   : > { %v456_v4 = vpop.f32.mrf.mxu0 }
 0x1f5   : > { %v462_v37 = vadd.f32 %v456_v4, %v400_v30  ;;  %v467_v42 = vsel %vm295_vm11, %v461_v34, 0.0 }
 0x1f6   : > { %v523_v5 = vpop.f32.mrf.mxu1  ;;  %v458_v6 = vpop.f32.mrf.mxu0 }
 0x1f7   : > { %v468_v47 = vsel %vm296_vm12, %v462_v37, 0.0 }
 0x1f8   : > { %v525_v7 = vpop.f32.mrf.mxu1  ;;  %v459_v8 = vpop.f32.mrf.mxu0 }
 0x1fa   : > { %v527_v9 = vpop.f32.mrf.mxu1 }
 0x1fc   : > { %v528_v10 = vpop.f32.mrf.mxu1 }
 0x1fd   : > { %v578_v11 = vpop.f32.mrf.mxu0 }
 0x1fe   : > { %v579_v28 = vadd.f32 %v578_v11, %v523_v5 }
 0x1ff   : > { %v580_v12 = vpop.f32.mrf.mxu0 }
 0x200   : > { %v581_v33 = vadd.f32 %v580_v12, %v525_v7 }
 0x201   : > { %v582_v13 = vpop.f32.mrf.mxu0 }
 0x202   : > { %v635_v14 = vpop.f32.mrf.mxu1 }
 0x203   : > { %v583_v15 = vpop.f32.mrf.mxu0  ;;  %v642_v36 = vadd.f32 %v635_v14, %v579_v28 }
 0x204   : > { %v637_v16 = vpop.f32.mrf.mxu1 }
 0x205   : > { %v643_v40 = vadd.f32 %v637_v16, %v581_v33  ;;  %v644_v45 = vadd.f32 %v642_v36, %v467_v42 }
 0x206   : > { %v639_v18 = vpop.f32.mrf.mxu1 }
 0x207   : > { %v645_v51 = vadd.f32 %v643_v40, %v468_v47 }
 0x208   : > { %v640_v19 = vpop.f32.mrf.mxu1 }
 0x209   : > { %v698_v21 = vpop.f32.mrf.mxu0 }
 0x20b   : > { %v700_v22 = vpop.f32.mrf.mxu0 }
 0x20d   : > { %v702_v24 = vpop.f32.mrf.mxu0 }
 0x20e   : > { %v753_v26 = vpop.f32.mrf.mxu1 }
 0x20f   : > { %v703_v29 = vpop.f32.mrf.mxu0  ;;  %v754_v38 = vadd.f32 %v753_v26, %v698_v21 }
 0x210   : > { %v755_v31 = vpop.f32.mrf.mxu1 }
 0x211   : > { %v756_v43 = vadd.f32 %v755_v31, %v700_v22 }
 0x212   : > { %v757_v35 = vpop.f32.mrf.mxu1 }
 0x214   : > { %v758_v39 = vpop.f32.mrf.mxu1 }
 0x215   : > { %v810_v41 = vpop.f32.mrf.mxu0 }
 0x216   : > { %v817_v44 = vadd.f32 %v810_v41, %v754_v38 }
 0x217   : > { %v812_v46 = vpop.f32.mrf.mxu0 }
 0x218   : > { %v823_v48 = vsel %vm297_vm13, %v817_v44, 0.0  ;;  %v818_v49 = vadd.f32 %v812_v46, %v756_v43 }
 0x219   : > { %v814_v52 = vpop.f32.mrf.mxu0  ;;  %v825_v53 = vadd.f32 %v823_v48, %v644_v45 }
 0x21a   : > { %v824_v54 = vsel %vm298_vm14, %v818_v49, 0.0 }
 0x21b   : > { %v826_v55 = vadd.f32 %v824_v54, %v645_v51  ;;  %v833_v56 = vadd.f32 %v831_v50, %v825_v53  ;;  %v815_v57 = vpop.f32.mrf.mxu0 }
 0x21d   : > { %v834_v58 = vadd.f32 %v831_v50, %v826_v55  ;;  %v835_v59 = vmax.f32 %v833_v56, 0.0 }
 0x21f   : > { %v836_v60 = vmax.f32 %v834_v58, 0.0  ;;  %v838_v61 = vpack.c.bf16 %v835_v59, %v835_v59 }
 0x221   : > { %v839_v62 = vpack.c.bf16 %v836_v60, %v836_v60  ;;  %v852_v63 = vsel %vm850_vm15, %v838_v61, 0 }
 0x223   : > { %1015 = vmatprep.subr.msk.bf16.mxu1 %vm850_vm15, %v839_v62 }
 0x224   : > { %872 = vmatpush1.bf16.msra.mxu1 %v852_v63 }
 0x227   : > { %1016 = vmatmul.mubr.msk.bf16.vlgmr.msra.gmra.mxu1 %vm846_vm0, %v837_v0 }
 0x2e7   : > { %v891_v2 = vpop.f32.mrf.mxu1 }
 0x2e8   : > { %v892_v3 = vadd.f32 %v891_v2, %v844_v1 }
 0x2e9   : > { %v893_v4 = vpop.f32.mrf.mxu1 }
 0x2ea   : > { %v894_v5 = vadd.f32 %v893_v4, %v844_v1  ;;  %898 = vst [vmem:[%s242_s7] sm:$0xff] %v892_v3 }
 0x2eb   : > { %v895_v6 = vpop.f32.mrf.mxu1 }
 0x2ec   : > { %899 = vst [vmem:[%s242_s7 + $0x8] sm:$0xff] %v894_v5 }
 0x2ed   : > { %v896_v7 = vpop.f32.mrf.mxu1 }
 0x2ee   : > { %1128 = shalt.err (!%p1125_p10)
}
 0x2ef   : > { %s1129_s12 = scalar_lea.hbm %s1395_s13, 256  ;;  %s1133_s29 = scalar_lea.hbm %s1443_s5, 512 }
 0x2f0   : > { %p1130_p0 = scmp.ne.s32.totalorder %s1395_s13, %s1129_s12  ;;  %p1134_p1 = scmp.lt.s32.totalorder %s1395_s13, %s1443_s5 }
 0x2f1   : > { %p1135_p3 = scmp.lt.s32.totalorder %s1133_s29, %s1129_s12 }
 0x2f2   : > { %p1131_p2 = pnand %p1130_p0, %p1452_p12 }
 0x2f3   : > { %p1136_p6 = por %p1135_p3, %p1134_p1 }
 0x2f4   : > { %p1132_p9 = pneg %p1131_p2 }
 0x2f6   : > { %p1137_p11 = pnand %p1136_p6, %p1132_p9 }
 0x2f8   : > { %1140 = shalt.err (!%p1137_p11)
}
 0x2f9   : > { %1026 = dma.vmem_to_hbm [thread:$0]  (%p1452_p12), %s1397_s9, 256, %s1395_s13, %s901_s22  }
 0x2fa PF: > { %s927_s8 = sand.u32 1, %s1167_s18   ;;  %p1453_p13 = scmp.ne.s32.totalorder %s1449_s6, 0 }
 0x2fb   : > { %p1454_p4 = scmp.ge.s32.totalorder %s1179_s21, 2  ;;  %s928_s7 = scalar_lea.sflag [#allocation4], %s927_s8 }
 0x2fd   : > { %p1033_p5 = pnand %p1454_p4, %p1453_p13 }
 0x2ff   : > { %p1034_p7 = pneg %p1033_p5 }
 0x301   : > { %1162 = dma.done.wait (%p1034_p7), %s928_s7, 256  }
 0x302   : > { %1164 = vsyncadd (%p1034_p7), %s928_s7, 4294967040  ;;  %p18_p8 = scmp.ge.s32.totalorder %s1250_s24, 4   ;;  %s1455_s18 = smov %s1171_s19 }
 0x303   : > { %s1456_s19 = smov %s1175_s20  ;;  %s1457_s20 = smov %s1262_s27 }
 0x304   : > { %s1458_s21 = smov %s1250_s24  ;;  %20 = sbr.rel (!%p18_p8) target bundleno = 5 (0x5), region = 93 }
 0x309   :  { %933 = vsyncpa [#allocation3], 1 }
 0x30a   :  { %935 = vsyncpa [#allocation3 + $0x1], 1 }
 0x30b   :  { %936 = vsyncpa [#allocation4], 1 }
 0x30c   :  { %938 = vsyncpa [#allocation4 + $0x1], 1 }

</bundles_post_ra>
